<compile_context>
chip_gen: v6e
topology: v6e:2x2x1
jax: 0.10.0
libtpu: 0.0.40
codegen_flags: <defaults>
</compile_context>

<pallas_src>
import math

import jax
import jax.numpy as jnp
from jax.experimental import pallas as pl
from jax.experimental.pallas import tpu as pltpu


def _round_up(x, m):
    return ((x + m - 1) // m) * m


def _largest_tile(padded, align, target):
    """Largest multiple of `align` that divides `padded` and is <= target.

    `padded` must already be a multiple of `align`.  Always returns >= align.
    """
    q = padded // align
    target_q = max(target // align, 1)
    best = 1
    d = 1
    while d * d <= q:
        if q % d == 0:
            for c in (d, q // d):
                if c <= target_q and c > best:
                    best = c
        d += 1
    return align * best


def _vmem_budget_bytes():
    """Usable VMEM budget, generation-aware (v7x: 64 MiB, v5e/v6e: 128 MiB)."""
    cap = 64 * 1024 * 1024  # conservative default (v7x physical VMEM per TC)
    try:
        cap = int(getattr(pltpu.get_tpu_info(), "vmem_capacity_bytes", cap))
    except Exception:
        pass
    # Leave headroom for compiler-internal scratch: ~44 MiB on v7x, ~89 MiB v5e/v6e.
    return int(cap * 0.7)


def linear_block_kernel(x_ref, w_ref, b_ref, o_ref, acc_ref):
    """One (i, j, k) grid step of o = x @ w + b (Identity activation)."""
    k = pl.program_id(2)

    @pl.when(k == 0)
    def _init():
        acc_ref[...] = jnp.zeros_like(acc_ref)

    # MXU matmul (bf16 or f32 inputs) with f32 accumulation.
    acc_ref[...] += jnp.dot(
        x_ref[...], w_ref[...], preferred_element_type=jnp.float32
    )

    @pl.when(k == pl.num_programs(2) - 1)
    def _finalize():
        # Bias added once in the K-finalize step; Identity activation is a no-op.
        o_ref[...] = (acc_ref[...] + b_ref[...]).astype(o_ref.dtype)


def make_linear_block(
    weight,
    bias,
    *,
    compute_dtype=jnp.bfloat16,
    out_dtype=None,
    tm_target=512,
    tn_target=512,
    tk_target=None,
    extra_w_buffering=False,
):
    """Build a LinearBlock forward: apply(x) = x @ weight.T + bias.

    weight: [dim_out, dim_in] (PyTorch nn.Linear layout), bias: [dim_out].
    Weight transpose, cast, and padding happen ONCE here; the returned
    apply(x) only pads/casts the activation.
    """
    dim_out, dim_in = weight.shape
    assert bias.shape == (dim_out,)
    K, N = dim_in, dim_out

    # Pad the static weight/bias once (off the per-call hot path).
    k_pad = _round_up(K, 128)
    n_pad = _round_up(N, 128)
    w_t = jnp.asarray(weight).T.astype(compute_dtype)  # [K, N]
    w_p = w_t if (k_pad, n_pad) == (K, N) else jnp.pad(
        w_t, ((0, k_pad - K), (0, n_pad - N)))
    b_f32 = jnp.asarray(bias).astype(jnp.float32)
    b_p = (b_f32 if n_pad == N else jnp.pad(b_f32, (0, n_pad - N))).reshape(1, n_pad)

    dtb = jnp.dtype(compute_dtype).itemsize
    m_align = 16 if dtb == 2 else 8  # bf16 sublane packing needs 16-row tiles
    vmem_budget = _vmem_budget_bytes()

    def apply(x):
        M, Kx = x.shape
        assert Kx == K
        odt = out_dtype if out_dtype is not None else x.dtype
        odtb = jnp.dtype(odt).itemsize

        m_pad = _round_up(M, m_align)
        small_m = m_pad <= 128  # GEMV-like: weight-streaming, HBM-bound

        tk_tgt = tk_target if tk_target is not None else (
            k_pad if small_m else 2048 // dtb)
        tm = _largest_tile(m_pad, m_align, tm_target)
        tn = _largest_tile(n_pad, 128, tn_target)
        tk = _largest_tile(k_pad, 128, tk_tgt)

        w_bufs = 3 if (extra_w_buffering and small_m) else 2

        def vmem_est(tm_, tn_, tk_):
            return (2 * tm_ * tk_ * dtb          # x tiles (double-buffered)
                    + w_bufs * tk_ * tn_ * dtb   # w tiles
                    + 2 * tm_ * tn_ * odtb       # output tiles
                    + 2 * tn_ * 4                # bias tiles
                    + tm_ * tn_ * 4)             # f32 accumulator

        # Shrink tiles (tk, then tn, then tm) until they fit the VMEM budget.
        while vmem_est(tm, tn, tk) > vmem_budget:
            if tk > 128:
                tk = _largest_tile(k_pad, 128, tk // 2)
            elif tn > 128:
                tn = _largest_tile(n_pad, 128, tn // 2)
            elif tm > m_align:
                tm = _largest_tile(m_pad, m_align, tm // 2)
            else:
                break

        # Megacore (v7x has 2 TensorCores): keep >= 2 blocks on a parallel axis
        # when the problem is big enough to amortize the extra grid step.
        gm, gn = m_pad // tm, n_pad // tn
        if gm == 1 and gn == 1 and m_pad * n_pad * k_pad >= (1 << 22):
            if tn % 256 == 0:
                tn //= 2
            elif tm % (2 * m_align) == 0:
                tm //= 2

        grid = (m_pad // tm, n_pad // tn, k_pad // tk)

        # Only the activation is padded/cast per call.
        x_c = x.astype(compute_dtype)
        x_p = x_c if (m_pad, k_pad) == (M, K) else jnp.pad(
            x_c, ((0, m_pad - M), (0, k_pad - K)))

        # Bytes include tiling revisits: x re-read per N block, w per M block.
        cost = pl.CostEstimate(
            flops=2 * m_pad * n_pad * k_pad,
            transcendentals=0,
            bytes_accessed=(dtb * m_pad * k_pad * grid[1]
                            + dtb * k_pad * n_pad * grid[0]
                            + odtb * m_pad * n_pad
                            + 4 * n_pad * grid[0]),
        )

        if w_bufs > 2:
            w_spec = pl.BlockSpec((tk, tn), lambda i, j, k: (k, j),
                                  pipeline_mode=pl.Buffered(w_bufs))
        else:
            w_spec = pl.BlockSpec((tk, tn), lambda i, j, k: (k, j))

        vmem_limit = min(vmem_budget,
                         max(32 * 1024 * 1024, 2 * vmem_est(tm, tn, tk)))

        out_p = pl.pallas_call(
            linear_block_kernel,
            out_shape=jax.ShapeDtypeStruct((m_pad, n_pad), odt),
            grid_spec=pltpu.PrefetchScalarGridSpec(
                num_scalar_prefetch=0,
                grid=grid,
                in_specs=[
                    pl.BlockSpec((tm, tk), lambda i, j, k: (i, k)),
                    w_spec,
                    pl.BlockSpec((1, tn), lambda i, j, k: (0, j)),
                ],
                out_specs=pl.BlockSpec((tm, tn), lambda i, j, k: (i, j)),
                scratch_shapes=[pltpu.VMEM((tm, tn), jnp.float32)],
            ),
            compiler_params=pltpu.CompilerParams(
                dimension_semantics=("parallel", "parallel", "arbitrary"),
                vmem_limit_bytes=int(vmem_limit),
            ),
            cost_estimate=cost,
        )(x_p, w_p, b_p)

        if (m_pad, n_pad) != (M, N):
            out_p = out_p[:M, :N]
        return out_p

    return jax.jit(apply)


if __name__ == "__main__":
    key = jax.random.PRNGKey(0)

    # ---- Deployment-scale shapes implied by the module: batch=8, dim_in=32, dim_out=64.
    batch, dim_in, dim_out = 8, 32, 64
    kx, kw, kb, k2 = jax.random.split(key, 4)

    # Deterministic init mimicking torch.nn.Linear (U(-1/sqrt(fan_in), ...)).
    bound = 1.0 / math.sqrt(dim_in)
    weight = jax.random.uniform(
        kw, (dim_out, dim_in), dtype=jnp.float32, minval=-bound, maxval=bound
    )  # PyTorch layout [dim_out, dim_in]
    bias = jax.random.uniform(
        kb, (dim_out,), dtype=jnp.float32, minval=-bound, maxval=bound
    )
    x = jax.random.normal(kx, (batch, dim_in), dtype=jnp.float32)
    ref = x @ weight.T + bias[None, :]

    # f32 compute path (bit-accurate vs. the f32 reference).
    lin_f32 = make_linear_block(weight, bias, compute_dtype=jnp.float32)
    out_f32 = jax.block_until_ready(lin_f32(x))
    assert out_f32.shape == (batch, dim_out)
    assert jnp.allclose(out_f32, ref, atol=1e-5, rtol=1e-5)

    # Default bf16 compute path (MXU-native); looser tolerance for bf16 inputs.
    lin_bf16 = make_linear_block(weight, bias)
    out_bf16 = jax.block_until_ready(lin_bf16(x))
    assert out_bf16.shape == (batch, dim_out)
    assert jnp.allclose(out_bf16, ref, atol=3e-2, rtol=3e-2)

    # ---- Larger shape exercising the tiled path and the megacore N split.
    M2, K2d, N2 = 128, 256, 256
    ka, kb2, kc = jax.random.split(k2, 3)
    x2 = jax.random.normal(ka, (M2, K2d), dtype=jnp.float32)
    w2 = jax.random.normal(kb2, (N2, K2d), dtype=jnp.float32) * 0.05
    b2 = jax.random.normal(kc, (N2,), dtype=jnp.float32) * 0.05
    ref2 = x2 @ w2.T + b2[None, :]

    lin2 = make_linear_block(w2, b2)  # default tiles (single K block)
    out2 = jax.block_until_ready(lin2(x2))
    assert jnp.allclose(out2, ref2, atol=5e-2, rtol=5e-2)

    # Force multiple K steps + multiple N blocks to exercise the accumulator path.
    lin2_multik = make_linear_block(w2, b2, tn_target=128, tk_target=128)
    out2b = jax.block_until_ready(lin2_multik(x2))
    assert jnp.allclose(out2b, ref2, atol=5e-2, rtol=5e-2)

    print("KERNEL_OK")
</pallas_src>

<mosaic_0001>
module attributes {stable_mosaic.version = 11 : i64} {
  func.func @linear_block_kernel(%arg0: i32, %arg1: i32, %arg2: i32, %arg3: memref<8x128xf32, #tpu.memory_space<vmem>>, %arg4: memref<128x128xf32, #tpu.memory_space<vmem>>, %arg5: memref<1x128xf32, #tpu.memory_space<vmem>>, %arg6: memref<8x128xf32, #tpu.memory_space<vmem>>, %arg7: memref<8x128xf32, #tpu.memory_space<vmem>>) attributes {dimension_semantics = [#tpu.dimension_semantics<parallel>, #tpu.dimension_semantics<parallel>, #tpu.dimension_semantics<arbitrary>], iteration_bounds = array<i64: 1, 1, 1>, scalar_prefetch = 0 : i64, scratch_operands = 1 : i64, tpu.core_type = #tpu.core_type<tc>, window_params = [{transform_indices = @transform_0, window_bounds = array<i64: 8, 128>}, {transform_indices = @transform_1, window_bounds = array<i64: 128, 128>}, {transform_indices = @transform_2, window_bounds = array<i64: 1, 128>}, {transform_indices = @transform_3, window_bounds = array<i64: 8, 128>}]} {
    %c0_i32 = arith.constant 0 : i32
    %0 = arith.cmpi eq, %arg2, %c0_i32 : i32
    %1 = arith.extui %0 : i1 to i32
    %c0_i32_0 = arith.constant 0 : i32
    %2 = arith.cmpi ne, %1, %c0_i32_0 : i32
    scf.if %2 {
      %cst_10 = arith.constant 0.000000e+00 : f32
      %12 = vector.broadcast %cst_10 : f32 to vector<8x128xf32>
      %c0_11 = arith.constant 0 : index
      %c0_12 = arith.constant 0 : index
      %13 = vector.load %arg7[%c0_11, %c0_12] : memref<8x128xf32, #tpu.memory_space<vmem>>, vector<8x128xf32>
      tpu.vector_store %arg7[%c0_11, %c0_12], %12 {strides = array<i32>} : memref<8x128xf32, #tpu.memory_space<vmem>>, vector<8x128xf32>,
    } else {
    }
    %c0 = arith.constant 0 : index
    %c0_1 = arith.constant 0 : index
    %3 = vector.load %arg7[%c0, %c0_1] : memref<8x128xf32, #tpu.memory_space<vmem>>, vector<8x128xf32>
    %c0_2 = arith.constant 0 : index
    %c0_3 = arith.constant 0 : index
    %4 = vector.load %arg3[%c0_2, %c0_3] : memref<8x128xf32, #tpu.memory_space<vmem>>, vector<8x128xf32>
    %c0_4 = arith.constant 0 : index
    %c0_5 = arith.constant 0 : index
    %5 = vector.load %arg4[%c0_4, %c0_5] : memref<128x128xf32, #tpu.memory_space<vmem>>, vector<128x128xf32>
    %cst = arith.constant dense<0.000000e+00> : vector<8x128xf32>
    %6 = tpu.matmul %4, %5, %cst {dimension_numbers = #tpu.dot_dimension_numbers<[1], [0], [0], [1], [0, 0, 1, 1], [], []>} : vector<8x128xf32>, vector<128x128xf32>, vector<8x128xf32> -> vector<8x128xf32>
    %7 = arith.addf %3, %6 : vector<8x128xf32>
    %c0_6 = arith.constant 0 : index
    %c0_7 = arith.constant 0 : index
    %8 = vector.load %arg7[%c0_6, %c0_7] : memref<8x128xf32, #tpu.memory_space<vmem>>, vector<8x128xf32>
    tpu.vector_store %arg7[%c0_6, %c0_7], %7 {strides = array<i32>} : memref<8x128xf32, #tpu.memory_space<vmem>>, vector<8x128xf32>,
    %c0_i32_8 = arith.constant 0 : i32
    %9 = arith.cmpi eq, %arg2, %c0_i32_8 : i32
    %10 = arith.extui %9 : i1 to i32
    %c0_i32_9 = arith.constant 0 : i32
    %11 = arith.cmpi ne, %10, %c0_i32_9 : i32
    scf.if %11 {
      %c0_10 = arith.constant 0 : index
      %c0_11 = arith.constant 0 : index
      %12 = vector.load %arg7[%c0_10, %c0_11] : memref<8x128xf32, #tpu.memory_space<vmem>>, vector<8x128xf32>
      %c0_12 = arith.constant 0 : index
      %c0_13 = arith.constant 0 : index
      %13 = vector.load %arg5[%c0_12, %c0_13] : memref<1x128xf32, #tpu.memory_space<vmem>>, vector<1x128xf32>
      %14 = vector.broadcast %13 : vector<1x128xf32> to vector<8x128xf32>
      %15 = arith.addf %12, %14 : vector<8x128xf32>
      %c0_14 = arith.constant 0 : index
      %c0_15 = arith.constant 0 : index
      %16 = vector.load %arg6[%c0_14, %c0_15] : memref<8x128xf32, #tpu.memory_space<vmem>>, vector<8x128xf32>
      tpu.vector_store %arg6[%c0_14, %c0_15], %15 {strides = array<i32>} : memref<8x128xf32, #tpu.memory_space<vmem>>, vector<8x128xf32>,
    } else {
    }
    return
  }
  func.func @transform_0(%arg0: i32, %arg1: i32, %arg2: i32) -> (i32, i32) {
    %c0_i32 = arith.constant 0 : i32
    return %arg0, %arg2 : i32, i32
  }
  func.func @transform_1(%arg0: i32, %arg1: i32, %arg2: i32) -> (i32, i32) {
    %c0_i32 = arith.constant 0 : i32
    return %arg2, %arg1 : i32, i32
  }
  func.func @transform_2(%arg0: i32, %arg1: i32, %arg2: i32) -> (i32, i32) {
    %c0_i32 = arith.constant 0 : i32
    %c0_i32_0 = arith.constant 0 : i32
    return %c0_i32, %arg1 : i32, i32
  }
  func.func @transform_3(%arg0: i32, %arg1: i32, %arg2: i32) -> (i32, i32) {
    %c0_i32 = arith.constant 0 : i32
    return %arg0, %arg1 : i32, i32
  }
}

</mosaic_0001>

<bundles_post_ra>
// kernel: apply.1
= control target key start
LH: loop header
LB: loop body
LE: loop exit
PB: predicated region body
PF: predicated region fallthrough
CT: control target
= control target key end

     0   :  { %8 = vsyncpa [#allocation4], 0  ;;  %s293_s0 = inlined_call_operand.vmem [shape: f32[8,128], index: 0, kind: input, shape index: {}]   ;;  %s294_s1 = inlined_call_operand.hbm [shape: f32[128,128], index: 1, kind: input, shape index: {}]   ;;  %s295_s2 = inlined_call_operand.vmem [shape: f32[1,128], index: 2, kind: input, shape index: {}]   ;;  %s296_s3 = inlined_call_operand.hbm [shape: f32[8,128], index: 3, kind: output, shape index: {}]  }
   0x1   :  { %9 = vsyncpa [#allocation5], 0  ;;  %s255_s12 = smov [#allocation3]  }
   0x2   :  { %s17_s13 = sshll.u32 %s255_s12, 4  ;;  %s18_s13 = int_to_ptr.vmem [resolvable:$true] %s17_s13 }
   0x3   :  { %s219_s14 = scalar_lea.vmem %s18_s13, 2048  ;;  %p224_p1 = scmp.lt.s32.totalorder %s18_s13, %s18_s13 }
   0x4   :  { %p220_p0 = scmp.ne.s32.totalorder %s18_s13, %s219_s14  ;;  %p225_p2 = scmp.lt.s32.totalorder %s219_s14, %s219_s14 }
   0x6   :  { %p226_p3 = por %p225_p2, %p224_p1 }
   0x8   :  { %p227_p4 = pnand %p226_p3, %p220_p0 }
   0xa   :  { %230 = shalt.err (!%p227_p4)
}
   0xb   :  { %s256_s15 = smov 128   ;;  %s257_s16 = smov 8  }
   0xc   :  { %23 = dma.hbm_to_vmem [thread:$0]  %s294_s1, 2048, %s18_s13, [#allocation4], %s256_s15, %s256_s15, %s257_s16  }
   0xd   :  { %251 = dma.done.wait [#allocation4], 2048  }
   0xe   :  { %252 = vsyncadd [#allocation4], 4294965248  ;;  %v258_v0 = vmov 0.0   ;;  %vm259_vm0 = vmmov 0   ;;  %v51_v1 = vld [vmem:[#allocation3 + $0x78] sm:$0xff]  ;;  %v50_v2 = vld [vmem:[#allocation3 + $0x70] sm:$0xff] }
   0xf   :  { %170 = vmatprep.subr.mxu0 %v258_v0  ;;  %202 = vmatprep.mubr.msk.f32.mxu0 %vm259_vm0, %v258_v0  ;;  %v49_v3 = vld [vmem:[#allocation3 + $0x68] sm:$0xff]  ;;  %v48_v4 = vld [vmem:[#allocation3 + $0x60] sm:$0xff]  ;;  %v47_v5 = vld [vmem:[#allocation3 + $0x58] sm:$0xff]  ;;  %s260_s22 = smov [#allocation6]  }
  0x10   :  { %171 = vmatpush3.msra.mxu0 %v51_v1  ;;  %v46_v6 = vld [vmem:[#allocation3 + $0x50] sm:$0xff]  ;;  %v45_v7 = vld [vmem:[#allocation3 + $0x48] sm:$0xff]  ;;  %v44_v8 = vld [vmem:[#allocation3 + $0x40] sm:$0xff]  ;;  %s143_s23 = sshll.u32 %s260_s22, 4  ;;  %s144_s23 = int_to_ptr.vmem [resolvable:$true] %s143_s23 }
  0x11   :  { %172 = vmatprep.subr.mxu0 %v258_v0  ;;  %v43_v9 = vld [vmem:[#allocation3 + $0x38] sm:$0xff]  ;;  %v42_v10 = vld [vmem:[#allocation3 + $0x30] sm:$0xff]  ;;  %v41_v11 = vld [vmem:[#allocation3 + $0x28] sm:$0xff]  ;;  %s231_s24 = scalar_lea.vmem %s144_s23, 128  ;;  %p236_p6 = scmp.lt.s32.totalorder %s144_s23, %s144_s23 }
  0x12   :  { %173 = vmatpush3.msra.mxu0 %v50_v2  ;;  %v40_v12 = vld [vmem:[#allocation3 + $0x20] sm:$0xff]  ;;  %v39_v13 = vld [vmem:[#allocation3 + $0x18] sm:$0xff]  ;;  %v38_v14 = vld [vmem:[#allocation3 + $0x10] sm:$0xff]  ;;  %p232_p5 = scmp.ne.s32.totalorder %s144_s23, %s231_s24  ;;  %p237_p7 = scmp.lt.s32.totalorder %s231_s24, %s231_s24 }
  0x13   :  { %174 = vmatprep.subr.mxu0 %v258_v0  ;;  %v37_v15 = vld [vmem:[#allocation3 + $0x8] sm:$0xff]  ;;  %v36_v16 = vld [vmem:[#allocation3] sm:$0xff] }
  0x14   :  { %175 = vmatpush3.msra.mxu0 %v49_v3  ;;  %v35_v17 = vld [vmem:[%s293_s0] sm:$0xff]  ;;  %p238_p8 = por %p237_p7, %p236_p6 }
  0x15   :  { %176 = vmatprep.subr.mxu0 %v258_v0  ;;  %v152_v18 = vld [vmem:[%s295_s2] ss:$0 sm:$0xff] }
  0x16   :  { %177 = vmatpush3.msra.mxu0 %v48_v4  ;;  %p239_p9 = pnand %p238_p8, %p232_p5 }
  0x17   :  { %178 = vmatprep.subr.mxu0 %v258_v0 }
  0x18   :  { %179 = vmatpush3.msra.mxu0 %v47_v5 }
  0x19   :  { %180 = vmatprep.subr.mxu0 %v258_v0 }
  0x1a   :  { %181 = vmatpush3.msra.mxu0 %v46_v6 }
  0x1b   :  { %182 = vmatprep.subr.mxu0 %v258_v0 }
  0x1c   :  { %183 = vmatpush3.msra.mxu0 %v45_v7 }
  0x1d   :  { %184 = vmatprep.subr.mxu0 %v258_v0 }
  0x1e   :  { %185 = vmatpush3.msra.mxu0 %v44_v8 }
  0x1f   :  { %186 = vmatprep.subr.mxu0 %v258_v0 }
  0x20   :  { %187 = vmatpush3.msra.mxu0 %v43_v9 }
  0x21   :  { %188 = vmatprep.subr.mxu0 %v258_v0 }
  0x22   :  { %189 = vmatpush3.msra.mxu0 %v42_v10 }
  0x23   :  { %190 = vmatprep.subr.mxu0 %v258_v0 }
  0x24   :  { %191 = vmatpush3.msra.mxu0 %v41_v11 }
  0x25   :  { %192 = vmatprep.subr.mxu0 %v258_v0 }
  0x26   :  { %193 = vmatpush3.msra.mxu0 %v40_v12 }
  0x27   :  { %194 = vmatprep.subr.mxu0 %v258_v0 }
  0x28   :  { %195 = vmatpush3.msra.mxu0 %v39_v13 }
  0x29   :  { %196 = vmatprep.subr.mxu0 %v258_v0 }
  0x2a   :  { %197 = vmatpush3.msra.mxu0 %v38_v14 }
  0x2b   :  { %198 = vmatprep.subr.mxu0 %v258_v0 }
  0x2c   :  { %199 = vmatpush3.msra.mxu0 %v37_v15 }
  0x2d   :  { %200 = vmatprep.subr.mxu0 %v258_v0 }
  0x2e   :  { %201 = vmatpush3.msra.mxu0 %v36_v16 }
  0x2f   :  { %203 = vmatmul.mubr.f32.vlgmr.msra.gmra.mxu0 %v35_v17 }
  0xef   :  { %v118_v19 = vpop.f32.mrf.mxu0 }
  0xf0   :  { %v135_v20 = vadd.f32 %v152_v18, %v118_v19 }
  0xf1   :  { %v204_v21 = vpop.f32.mrf.mxu0 }
  0xf2   :  { %136 = vst [vmem:[#allocation6] sm:$0xff] %v135_v20 }
  0xf3   :  { %242 = shalt.err (!%p239_p9)
}
  0xf4   :  { %146 = dma.vmem_to_hbm [thread:$0]  %s144_s23, 128, %s296_s3, [#allocation5]  }
  0xf5   :  { %253 = dma.done.wait [#allocation5], 128  }
  0xf6   :  { %254 = vsyncadd [#allocation5], 4294967168 }
  0xf7   :  { %150 = vsyncpa [#allocation4], 1 }
  0xf8   :  { %151 = vsyncpa [#allocation5], 1 }

</bundles_post_ra>
